<compile_context>
chip_gen: v6e
topology: v6e:2x2x1
jax: 0.10.0
libtpu: 0.0.40
codegen_flags: <defaults>
</compile_context>

<pallas_src>
import functools

import jax
import jax.numpy as jnp
from jax.experimental import pallas as pl
from jax.experimental.pallas import tpu as pltpu


# Sublane packing by itemsize (f32 -> 8 rows per vreg, bf16 -> 16, int8 -> 32).
_SUBLANE = {1: 32, 2: 16, 4: 8}

# Below this many bytes, skip Pallas: launch overhead dwarfs the add, and inside
# a larger jitted graph XLA fuses `x + const` into neighbours for free.
_TINY_BYTES = 64 << 10

# Per-array bytes per block: 4 MiB x 2 pipeline buffers x 2 arrays = 16 MiB,
# made legal on every generation by the explicit scoped-VMEM limit below.
_TILE_BYTES = 4 << 20
_MAX_BLOCK_BYTES = 6 << 20
_VMEM_LIMIT_BYTES = 32 << 20   # <= physical VMEM on v5e/v6e (128 MiB) and v7x (64 MiB)

# Lane widths tried for the flat, lane-dense view (largest first).
_LANE_CANDIDATES = (4096, 2048, 1024, 512, 256, 128)


def _const_add_kernel(x_ref, o_ref, *, value):
    # 1 vld + (optional in-register cast) + 1 vadd + 1 vst per vreg.  VMEM
    # throughput is far above sustained HBM bandwidth on v5e/v6e/v7x, so the
    # DMA stream is the binding unit -> keep the body minimal (per perf review).
    o_ref[...] = x_ref[...].astype(o_ref.dtype) + jnp.asarray(value, dtype=o_ref.dtype)


@functools.partial(jax.jit, static_argnames=("value", "force_pallas"))
def _constant_add_impl(x, *, value, force_pallas):
    in_dtype = jnp.dtype(x.dtype)
    # PyTorch type promotion: float tensor keeps its dtype; int/bool tensor +
    # python float promotes to the default float dtype (float32).
    if jnp.issubdtype(in_dtype, jnp.floating):
        out_dtype = in_dtype
    else:
        out_dtype = jnp.dtype(jnp.float32)

    def _plain():
        # Single fused XLA elementwise add -- optimal for tiny / unsupported shapes.
        return (x + value).astype(out_dtype)

    n = x.size
    in_item = in_dtype.itemsize
    out_item = out_dtype.itemsize
    if n == 0 or in_item not in _SUBLANE or out_item not in _SUBLANE:
        return _plain()
    if n * max(in_item, out_item) < _TINY_BYTES and not force_pallas:
        return _plain()

    sub = max(_SUBLANE[in_item], _SUBLANE[out_item])
    budget_item = max(in_item, out_item)

    # ---- Choose a copy-free 2-D view (reshape is metadata-only under jit). ----
    lane = next((c for c in _LANE_CANDIDATES if n % c == 0), None)
    if lane is None:
        if x.ndim >= 2:
            # Keep the trailing dim: no padding, Pallas masks only the final
            # partial row block.  Stores may be lane-masked if dim < 128, but
            # that is far cheaper than two extra full HBM passes (pad + slice).
            lane = x.shape[-1]
        else:
            # 1-D/0-D tensor whose length has no multiple-of-128 divisor: a
            # plain XLA add is already a single optimal HBM pass; padding or a
            # prefix+tail concat would only add traffic.
            return _plain()
    rows = n // lane

    # ---- Row tiling: biggest sublane-aligned tile within the VMEM budget. ----
    rows_budget = _TILE_BYTES // (lane * budget_item)
    max_rows = max(sub, (rows_budget // sub) * sub)
    tb = rows if rows <= max_rows else max_rows   # full-dim block, or multiple of sub
    if tb * lane * budget_item > _MAX_BLOCK_BYTES:
        # Pathological ragged trailing dim too wide for a VMEM-friendly tile.
        return _plain()

    view = x.reshape(rows, lane)
    kernel = functools.partial(_const_add_kernel, value=value)
    out2d = pl.pallas_call(
        kernel,
        out_shape=jax.ShapeDtypeStruct((rows, lane), out_dtype),
        grid=(pl.cdiv(rows, tb),),
        in_specs=[pl.BlockSpec((tb, lane), lambda i: (i, 0))],
        out_specs=pl.BlockSpec((tb, lane), lambda i: (i, 0)),
        compiler_params=pltpu.CompilerParams(
            # Row tiles are independent; safe on all generations.
            dimension_semantics=("parallel",),
            vmem_limit_bytes=_VMEM_LIMIT_BYTES,
        ),
        cost_estimate=pl.CostEstimate(
            flops=n,
            transcendentals=0,
            bytes_accessed=n * (in_item + out_item),
        ),
    )(view)
    return out2d.reshape(x.shape)


def constant_add_pallas(x: jax.Array, value: float, *, force_pallas: bool = False) -> jax.Array:
    """x + value computed in a Pallas TPU kernel (layout-agnostic elementwise)."""
    return _constant_add_impl(x, value=float(value), force_pallas=bool(force_pallas))


class FeatureOrderHolder:
    """Minimal JAX-side analog of the PyTorch FeatureOrderHolder."""

    def __init__(self, feature_order):
        self._ids = {name: i for i, name in enumerate(feature_order)}

    def get_ids(self, names):
        return [self._ids[n] for n in names]


class ConstantAddNet:
    """JAX/Pallas port of ConstantAddNet (no learnable parameters)."""

    def __init__(self, value: float, name: str, holder: FeatureOrderHolder, dim: int,
                 force_pallas: bool = False):
        self.value = value
        self.name = name
        self.holder = holder
        self.dim = dim
        self.force_pallas = force_pallas

    def forward(self, tensors):
        idx = self.holder.get_ids([self.name])[0]
        return constant_add_pallas(tensors[idx], self.value, force_pallas=self.force_pallas)

    __call__ = forward

    def get_out_features(self) -> int:
        return self.dim


if __name__ == "__main__":
    key = jax.random.PRNGKey(0)
    k0, k1, k2, k3 = jax.random.split(key, 4)

    # --- Small [B, D] feature matrices; force the Pallas path despite size. ---
    batch, dim = 8, 32
    tensors = [
        jax.random.normal(k0, (batch, dim), dtype=jnp.float32),
        jax.random.normal(k1, (batch, dim), dtype=jnp.float32),
    ]
    holder = FeatureOrderHolder(["feat_a", "feat_b"])
    net = ConstantAddNet(value=3.5, name="feat_b", holder=holder, dim=dim, force_pallas=True)

    out = jax.block_until_ready(net.forward(tensors))
    ref = tensors[1] + 3.5
    assert out.shape == (batch, dim)
    assert out.dtype == jnp.float32
    assert jnp.allclose(out, ref, atol=1e-6, rtol=1e-6)

    # --- Ragged size with no multiple-of-128 divisor: masked partial-block path
    #     (no padding, no extra HBM passes). ---
    x_ragged = jax.random.normal(k2, (9, 96), dtype=jnp.float32)
    out_ragged = jax.block_until_ready(constant_add_pallas(x_ragged, 0.75, force_pallas=True))
    assert out_ragged.shape == (9, 96)
    assert jnp.allclose(out_ragged, x_ragged + 0.75, atol=1e-6, rtol=1e-6)

    # --- Integer input promotes to float32 (PyTorch int tensor + python float). ---
    x_int = jax.random.randint(k3, (8, 32), minval=-5, maxval=5, dtype=jnp.int32)
    out_int = jax.block_until_ready(constant_add_pallas(x_int, 3.5, force_pallas=True))
    assert out_int.dtype == jnp.float32
    assert jnp.allclose(out_int, x_int.astype(jnp.float32) + 3.5, atol=1e-6, rtol=1e-6)

    print("KERNEL_OK")
</pallas_src>

<mosaic_0001>
module attributes {stable_mosaic.version = 11 : i64} {
  func.func @_const_add_kernel(%arg0: i32, %arg1: memref<1x256xf32, #tpu.memory_space<vmem>>, %arg2: memref<1x256xf32, #tpu.memory_space<vmem>>) attributes {dimension_semantics = [#tpu.dimension_semantics<parallel>], iteration_bounds = array<i64: 1>, scalar_prefetch = 0 : i64, scratch_operands = 0 : i64, tpu.core_type = #tpu.core_type<tc>, window_params = [{transform_indices = @transform_0, window_bounds = array<i64: 1, 256>}, {transform_indices = @transform_1, window_bounds = array<i64: 1, 256>}]} {
    %c0 = arith.constant 0 : index
    %c0_0 = arith.constant 0 : index
    %0 = vector.load %arg1[%c0, %c0_0] : memref<1x256xf32, #tpu.memory_space<vmem>>, vector<1x256xf32>
    %cst = arith.constant 3.500000e+00 : f32
    %1 = vector.broadcast %cst : f32 to vector<1x256xf32>
    %2 = arith.addf %0, %1 : vector<1x256xf32>
    %c0_1 = arith.constant 0 : index
    %c0_2 = arith.constant 0 : index
    %3 = vector.load %arg2[%c0_1, %c0_2] : memref<1x256xf32, #tpu.memory_space<vmem>>, vector<1x256xf32>
    tpu.vector_store %arg2[%c0_1, %c0_2], %2 {strides = array<i32>} : memref<1x256xf32, #tpu.memory_space<vmem>>, vector<1x256xf32>,
    return
  }
  func.func @transform_0(%arg0: i32) -> (i32, i32) {
    %c0_i32 = arith.constant 0 : i32
    %c0_i32_0 = arith.constant 0 : i32
    return %arg0, %c0_i32 : i32, i32
  }
  func.func @transform_1(%arg0: i32) -> (i32, i32) {
    %c0_i32 = arith.constant 0 : i32
    %c0_i32_0 = arith.constant 0 : i32
    return %arg0, %c0_i32 : i32, i32
  }
}

</mosaic_0001>

<bundles_post_ra>
// kernel: _constant_add_impl.1
= control target key start
LH: loop header
LB: loop body
LE: loop exit
PB: predicated region body
PF: predicated region fallthrough
CT: control target
= control target key end

     0   :  { %v10_v0 = vlaneseq  ;;  %s35_s0 = inlined_call_operand.vmem [shape: f32[1,256], index: 0, kind: input, shape index: {}]   ;;  %s36_s1 = inlined_call_operand.vmem [shape: f32[1,256], index: 1, kind: output, shape index: {}]  }
   0x1   :  { %v8_v1 = vld [vmem:[%s35_s0] sm:$0x3] }
   0x2   :  { %v9_v2 = vadd.f32 3.5, %v8_v1  ;;  %vm12_vm0 = vcmp.lt.s32.totalorder %v10_v0, 256 }
   0x4   :  { %14 = vst.msk [vmem:[%s36_s1] sm:$0x3] %vm12_vm0, %v9_v2 }

</bundles_post_ra>
